<compile_context>
chip_gen: v5e
topology: v5e:2x2
jax: 0.10.0
libtpu: 0.0.40
codegen_flags: <defaults>
</compile_context>

<pallas_src>
import functools
import math

import jax
import jax.numpy as jnp
from jax.experimental import pallas as pl
from jax.experimental.pallas import tpu as pltpu


# ---------------------------------------------------------------------------
# Kernels 1 & 3: lane-dense projections
# ---------------------------------------------------------------------------
def _matmul_kernel(x_ref, w_ref, o_ref):
    o_ref[...] = jnp.dot(x_ref[...], w_ref[...],
                         preferred_element_type=jnp.float32).astype(o_ref.dtype)


def _matmul_bias_kernel(x_ref, w_ref, b_ref, o_ref):
    acc = jnp.dot(x_ref[...], w_ref[...], preferred_element_type=jnp.float32)
    o_ref[...] = (acc + b_ref[...]).astype(o_ref.dtype)


def _qkv_proj(x2d, wqkv):
    M, d_in = x2d.shape
    N = wqkv.shape[1]
    return pl.pallas_call(
        _matmul_kernel,
        out_shape=jax.ShapeDtypeStruct((M, N), jnp.bfloat16),
        grid_spec=pltpu.PrefetchScalarGridSpec(
            num_scalar_prefetch=0,
            grid=(1,),
            in_specs=[pl.BlockSpec((M, d_in), lambda i: (0, 0)),
                      pl.BlockSpec((d_in, N), lambda i: (0, 0))],
            out_specs=pl.BlockSpec((M, N), lambda i: (0, 0)),
        ),
        compiler_params=pltpu.CompilerParams(dimension_semantics=("arbitrary",)),
        cost_estimate=pl.CostEstimate(
            flops=2 * M * N * d_in,
            transcendentals=0,
            bytes_accessed=2 * (M * d_in + d_in * N + M * N)),
    )(x2d, wqkv)


def _out_proj(x2d, wo, bo, out_dtype):
    M, d = x2d.shape
    N = wo.shape[1]
    return pl.pallas_call(
        _matmul_bias_kernel,
        out_shape=jax.ShapeDtypeStruct((M, N), out_dtype),
        grid_spec=pltpu.PrefetchScalarGridSpec(
            num_scalar_prefetch=0,
            grid=(1,),
            in_specs=[pl.BlockSpec((M, d), lambda i: (0, 0)),
                      pl.BlockSpec((d, N), lambda i: (0, 0)),
                      pl.BlockSpec((1, N), lambda i: (0, 0))],
            out_specs=pl.BlockSpec((M, N), lambda i: (0, 0)),
        ),
        compiler_params=pltpu.CompilerParams(dimension_semantics=("arbitrary",)),
        cost_estimate=pl.CostEstimate(
            flops=2 * M * N * d,
            transcendentals=0,
            bytes_accessed=2 * (M * d + d * N) + 4 * (N + M * N)),
    )(x2d, wo, bo)


# ---------------------------------------------------------------------------
# Kernel 2: causal flash attention with online softmax
# ---------------------------------------------------------------------------
def _flash_attn_kernel(q_ref, k_ref, v_ref, o_ref, m_sc, l_sc, acc_sc, *,
                       block_q, block_k):
    qi = pl.program_id(1)
    ki = pl.program_id(2)

    @pl.when(ki == 0)
    def _():
        m_sc[...] = jnp.full_like(m_sc, -1e30)
        l_sc[...] = jnp.zeros_like(l_sc)
        acc_sc[...] = jnp.zeros_like(acc_sc)

    q_start = qi * block_q
    k_start = ki * block_k

    # Causal block skipping: kv blocks strictly above the diagonal are no-ops.
    @pl.when(k_start <= q_start + block_q - 1)
    def _():
        # q already carries the 1/sqrt(head_dim) scale (folded into W_query).
        s = jnp.einsum('bqd,bkd->bqk', q_ref[...], k_ref[...],
                       preferred_element_type=jnp.float32)   # (1, bq, bk) f32

        row = q_start + jax.lax.broadcasted_iota(jnp.int32, (block_q, block_k), 0)
        col = k_start + jax.lax.broadcasted_iota(jnp.int32, (block_q, block_k), 1)
        # Large finite negative keeps partially-masked rows NaN-free.
        s = jnp.where((col > row)[None], -1e30, s)

        m_prev = m_sc[...]
        m_new = jnp.maximum(m_prev, jnp.max(s, axis=-1, keepdims=True))
        alpha = jnp.exp(m_prev - m_new)
        p = jnp.exp(s - m_new)                                # f32 softmax math
        l_sc[...] = alpha * l_sc[...] + jnp.sum(p, axis=-1, keepdims=True)
        acc_sc[...] = alpha * acc_sc[...] + jnp.einsum(
            'bqk,bkd->bqd', p.astype(v_ref.dtype), v_ref[...],
            preferred_element_type=jnp.float32)
        m_sc[...] = m_new

    @pl.when(ki == pl.num_programs(2) - 1)
    def _():
        # Exact divide (runs once per q block) for better accuracy than approx.
        o_ref[...] = (acc_sc[...] / l_sc[...]).astype(o_ref.dtype)


def _flash_attention(q, k, v, *, block_q, block_k):
    BH, L, hd = q.shape
    nq = L // block_q
    nk = L // block_k
    kernel = functools.partial(_flash_attn_kernel, block_q=block_q, block_k=block_k)
    return pl.pallas_call(
        kernel,
        out_shape=jax.ShapeDtypeStruct((BH, L, hd), jnp.bfloat16),
        grid_spec=pltpu.PrefetchScalarGridSpec(
            num_scalar_prefetch=0,
            grid=(BH, nq, nk),                     # kv reduction axis trails
            in_specs=[
                pl.BlockSpec((1, block_q, hd), lambda b, i, j: (b, i, 0)),   # q
                pl.BlockSpec((1, block_k, hd), lambda b, i, j: (b, j, 0)),   # k
                pl.BlockSpec((1, block_k, hd), lambda b, i, j: (b, j, 0)),   # v
            ],
            out_specs=pl.BlockSpec((1, block_q, hd), lambda b, i, j: (b, i, 0)),
            scratch_shapes=[
                pltpu.VMEM((1, block_q, 1), jnp.float32),    # running max m
                pltpu.VMEM((1, block_q, 1), jnp.float32),    # running denom l
                pltpu.VMEM((1, block_q, hd), jnp.float32),   # output accumulator
            ],
        ),
        compiler_params=pltpu.CompilerParams(
            dimension_semantics=("parallel", "parallel", "arbitrary")),
        cost_estimate=pl.CostEstimate(
            flops=4 * BH * L * L * hd,
            transcendentals=BH * L * L,
            bytes_accessed=2 * (3 * BH * L * hd + BH * L * hd)),
    )(q, k, v)


# ---------------------------------------------------------------------------
# Wrapper: PyTorch MultiHeadAttention forward (eval mode)
# ---------------------------------------------------------------------------
def multi_head_attention(x, wq, wk, wv, wo, bo, *, num_heads,
                         block_q=None, block_k=None):
    """x: (B, L, d_in); wq/wk/wv: (d_in, d_out); wo: (d_out, d_out); bo: (1, d_out)."""
    B, L, d_in = x.shape
    d_out = wq.shape[1]
    assert d_out % num_heads == 0, "d_out must be divisible by num_heads"
    H = num_heads
    hd = d_out // H
    scale = 1.0 / math.sqrt(hd)

    # Flash tile sizes (per-generation: multiples of 128 on v5e / 256 on v6e-v7x
    # for real L; the toy L=8 collapses to a single block).
    if block_q is None:
        block_q = min(L, 128)
    if block_k is None:
        block_k = min(L, 128)
    assert L % block_q == 0 and L % block_k == 0

    # One-time weight prep (plain XLA, outside the kernels):
    #  * fold the softmax 1/sqrt(head_dim) scale into W_query (paid once),
    #  * fuse Wq/Wk/Wv into a single lane-dense (d_in, 3*d_out) matrix,
    #  * NO replication of weights across batch or activations across heads.
    wqkv = jnp.concatenate([wq * scale, wk, wv], axis=1).astype(jnp.bfloat16)
    wo_b = wo.astype(jnp.bfloat16)
    x2d = x.reshape(B * L, d_in).astype(jnp.bfloat16)

    # Kernel 1: fused QKV projection.
    qkv = _qkv_proj(x2d, wqkv)                                    # (B*L, 3*d_out) bf16

    # Layout plumbing (pure XLA): split heads, bring (batch*head) to the front so
    # the flash kernel's blocks cover their full last two dims even for tiny hd.
    qkv = qkv.reshape(B, L, 3, H, hd).transpose(2, 0, 3, 1, 4)    # (3, B, H, L, hd)
    q = qkv[0].reshape(B * H, L, hd)
    k = qkv[1].reshape(B * H, L, hd)
    v = qkv[2].reshape(B * H, L, hd)

    # Kernel 2: causal flash attention.
    ctx = _flash_attention(q, k, v, block_q=block_q, block_k=block_k)  # (B*H, L, hd)

    # Merge heads back to (B*L, d_out) (pure XLA layout plumbing).
    ctx2d = ctx.reshape(B, H, L, hd).transpose(0, 2, 1, 3).reshape(B * L, d_out)

    # Kernel 3: output projection (single contraction over d_out) + bias.
    out = _out_proj(ctx2d, wo_b, bo.astype(jnp.float32), jnp.float32)
    return out.reshape(B, L, d_out).astype(x.dtype)


# ---------------------------------------------------------------------------
# Pure-JAX reference mirroring the PyTorch forward (eval mode)
# ---------------------------------------------------------------------------
def reference_mha(x, wq, wk, wv, wo, bo, *, num_heads):
    B, L, d_in = x.shape
    d_out = wq.shape[1]
    head_dim = d_out // num_heads
    q = x @ wq
    k = x @ wk
    v = x @ wv
    q = q.reshape(B, L, num_heads, head_dim).transpose(0, 2, 1, 3)
    k = k.reshape(B, L, num_heads, head_dim).transpose(0, 2, 1, 3)
    v = v.reshape(B, L, num_heads, head_dim).transpose(0, 2, 1, 3)
    scores = jnp.einsum("bhqd,bhkd->bhqk", q, k)
    mask = jnp.triu(jnp.ones((L, L), dtype=bool), k=1)
    scores = jnp.where(mask[None, None], -jnp.inf, scores)
    w = jax.nn.softmax(scores / math.sqrt(head_dim), axis=-1)
    ctx = jnp.einsum("bhqk,bhkd->bhqd", w, v).transpose(0, 2, 1, 3).reshape(B, L, d_out)
    return ctx @ wo + bo


if __name__ == "__main__":
    # Module hyperparameters (small, consistent with the forward pass).
    B, L = 2, 8
    d_in, d_out = 32, 32
    num_heads = 4
    context_length = 8        # causal mask covers [:L, :L]
    dropout = 0.0             # eval-mode / identity

    key = jax.random.PRNGKey(0)
    kx, kq, kk, kv, ko, kb = jax.random.split(key, 6)

    x = jax.random.normal(kx, (B, L, d_in), dtype=jnp.float32)

    # Deterministic "Linear" parameters, stored as (in, out) = W.T of torch layout.
    s_in = 1.0 / math.sqrt(d_in)
    s_out = 1.0 / math.sqrt(d_out)
    wq = jax.random.uniform(kq, (d_in, d_out), jnp.float32, -s_in, s_in)
    wk = jax.random.uniform(kk, (d_in, d_out), jnp.float32, -s_in, s_in)
    wv = jax.random.uniform(kv, (d_in, d_out), jnp.float32, -s_in, s_in)
    wo = jax.random.uniform(ko, (d_out, d_out), jnp.float32, -s_out, s_out)
    bo = jax.random.uniform(kb, (1, d_out), jnp.float32, -s_out, s_out)

    out = multi_head_attention(x, wq, wk, wv, wo, bo, num_heads=num_heads)
    out = jax.block_until_ready(out)

    ref = reference_mha(x, wq, wk, wv, wo, bo[0], num_heads=num_heads)
    assert out.shape == (B, L, d_out)
    # bf16 MXU operands / bf16 inter-kernel activations => looser tolerance than f32.
    assert jnp.allclose(out, ref, atol=3e-2, rtol=3e-2), "mismatch vs reference"

    print("KERNEL_OK")
</pallas_src>

<mosaic_0001>
module attributes {stable_mosaic.version = 11 : i64} {
  func.func @_matmul_kernel(%arg0: i32, %arg1: memref<16x32xbf16, #tpu.memory_space<vmem>>, %arg2: memref<32x96xbf16, #tpu.memory_space<vmem>>, %arg3: memref<16x96xbf16, #tpu.memory_space<vmem>>) attributes {dimension_semantics = [#tpu.dimension_semantics<arbitrary>], iteration_bounds = array<i64: 1>, scalar_prefetch = 0 : i64, scratch_operands = 0 : i64, tpu.core_type = #tpu.core_type<tc>, window_params = [{pipeline_mode = #tpu.pipeline_mode<synchronous>, transform_indices = @transform_0, window_bounds = array<i64: 16, 32>}, {pipeline_mode = #tpu.pipeline_mode<synchronous>, transform_indices = @transform_1, window_bounds = array<i64: 32, 96>}, {pipeline_mode = #tpu.pipeline_mode<synchronous>, transform_indices = @transform_2, window_bounds = array<i64: 16, 96>}]} {
    %c0 = arith.constant 0 : index
    %c0_0 = arith.constant 0 : index
    %0 = vector.load %arg1[%c0, %c0_0] : memref<16x32xbf16, #tpu.memory_space<vmem>>, vector<16x32xbf16>
    %c0_1 = arith.constant 0 : index
    %c0_2 = arith.constant 0 : index
    %1 = vector.load %arg2[%c0_1, %c0_2] : memref<32x96xbf16, #tpu.memory_space<vmem>>, vector<32x96xbf16>
    %cst = arith.constant dense<0.000000e+00> : vector<16x96xf32>
    %2 = tpu.matmul %0, %1, %cst {dimension_numbers = #tpu.dot_dimension_numbers<[1], [0], [0], [1], [0, 0, 1, 1], [], []>} : vector<16x32xbf16>, vector<32x96xbf16>, vector<16x96xf32> -> vector<16x96xf32>
    %3 = arith.truncf %2 : vector<16x96xf32> to vector<16x96xbf16>
    %c0_3 = arith.constant 0 : index
    %c0_4 = arith.constant 0 : index
    %4 = vector.load %arg3[%c0_3, %c0_4] : memref<16x96xbf16, #tpu.memory_space<vmem>>, vector<16x96xbf16>
    tpu.vector_store %arg3[%c0_3, %c0_4], %3 {strides = array<i32>} : memref<16x96xbf16, #tpu.memory_space<vmem>>, vector<16x96xbf16>,
    return
  }
  func.func @transform_0(%arg0: i32) -> (i32, i32) {
    %c0_i32 = arith.constant 0 : i32
    %c0_i32_0 = arith.constant 0 : i32
    %c0_i32_1 = arith.constant 0 : i32
    return %c0_i32, %c0_i32_0 : i32, i32
  }
  func.func @transform_1(%arg0: i32) -> (i32, i32) {
    %c0_i32 = arith.constant 0 : i32
    %c0_i32_0 = arith.constant 0 : i32
    %c0_i32_1 = arith.constant 0 : i32
    return %c0_i32, %c0_i32_0 : i32, i32
  }
  func.func @transform_2(%arg0: i32) -> (i32, i32) {
    %c0_i32 = arith.constant 0 : i32
    %c0_i32_0 = arith.constant 0 : i32
    %c0_i32_1 = arith.constant 0 : i32
    return %c0_i32, %c0_i32_0 : i32, i32
  }
}

</mosaic_0001>

<bundles_post_ra>
// kernel: tpu_custom_call.1
= control target key start
LH: loop header
LB: loop body
LE: loop exit
PB: predicated region body
PF: predicated region fallthrough
CT: control target
= control target key end

     0   :  { %7 = vsyncpa [#allocation3], 0  ;;  %s248_s0 = inlined_call_operand.hbm [shape: bf16[16,32], index: 0, kind: input, shape index: {}]   ;;  %s249_s1 = inlined_call_operand.hbm [shape: bf16[32,96], index: 1, kind: input, shape index: {}]   ;;  %s250_s2 = inlined_call_operand.hbm [shape: bf16[16,96], index: 2, kind: output, shape index: {}]  }
   0x1   :  { %8 = vsyncpa [#allocation6], 0 }
   0x2   :  { %9 = vsyncpa [#allocation4], 0  ;;  %s14_s11 = sshll.u32 %s248_s0, 4  ;;  %s210_s12 = smov [#allocation2]   ;;  %s15_s11 = int_to_ptr.hbm [resolvable:$true] %s14_s11 }
   0x3   :  { %s16_s13 = sshll.u32 %s210_s12, 4  ;;  %s27_s16 = sshll.u32 %s249_s1, 4  ;;  %s17_s13 = int_to_ptr.vmem [resolvable:$true] %s16_s13  ;;  %s28_s16 = int_to_ptr.hbm [resolvable:$true] %s27_s16 }
   0x4   :  { %s211_s17 = smov 64   ;;  %s212_s18 = smov 4  }
   0x5   :  { %22 = dma.hbm_to_vmem [thread:$0]  %s15_s11, 128, %s17_s13, [#allocation3], %s211_s17, %s211_s17, %s212_s18  }
   0x6   :  { %s213_s19 = smov [#allocation5]  }
   0x7   :  { %s29_s20 = sshll.u32 %s213_s19, 4  ;;  %s30_s20 = int_to_ptr.vmem [resolvable:$true] %s29_s20 }
   0x8   :  { %35 = dma.hbm_to_vmem [thread:$0]  %s28_s16, 256, %s30_s20, [#allocation6], %s211_s17, %s211_s17, %s212_s18  }
   0x9   :  { %204 = dma.done.wait [#allocation3], 128  }
   0xa   :  { %205 = vsyncadd [#allocation3], 4294967168 }
   0xb   :  { %206 = dma.done.wait [#allocation6], 256  }
   0xc   :  { %207 = vsyncadd [#allocation6], 4294967040  ;;  %v126_v0 = vld [vmem:[#allocation5 + $0x8] sm:$0xff]  ;;  %v125_v1 = vld [vmem:[#allocation5] sm:$0xff]  ;;  %vm68_vm0 = vcmask 261120   ;;  %vm88_vm1 = vcmask 781312  }
   0xd   :  { %78 = vmatpush.bf16.msra.mxu0 %v126_v0  ;;  %v124_v2 = vld [vmem:[#allocation2] sm:$0xff]  ;;  %s214_s0 = smov [#allocation7]   ;;  %s97_s23 = sshll.u32 %s250_s2, 4  ;;  %s98_s23 = int_to_ptr.hbm [resolvable:$true] %s97_s23 }
   0xe   :  { %s95_s1 = sshll.u32 %s214_s0, 4  ;;  %s96_s1 = int_to_ptr.vmem [resolvable:$true] %s95_s1 }
  0x11   :  { %79 = vmatpush.bf16.msra.mxu0 %v125_v1 }
  0x14   :  { %123 = vmatmul.msk.bf16.vlgmr.msra.gmra.mxu0 %vm68_vm0, %v124_v2 }
  0x91   :  { %v81_v3 = vpop.f32.mrf.mxu0 }
  0x92   :  { %v86_v4 = vpack.c.bf16 %v81_v3, %v81_v3 }
  0x94   :  { %89 = vst.msk [vmem:[#allocation7] sm:$0xf] %vm88_vm1, %v86_v4 }
  0x99   :  { %v83_v5 = vpop.f32.mrf.mxu0 }
  0x9a   :  { %v87_v6 = vpack.c.bf16 %v83_v5, %v83_v5 }
  0x9c   :  { %90 = vst.msk [vmem:[#allocation7 + $0x4] sm:$0xf] %vm88_vm1, %v87_v6 }
  0x9d   :  { %103 = dma.vmem_to_hbm [thread:$0]  %s96_s1, 128, %s98_s23, [#allocation4], %s211_s17, %s211_s17, %s212_s18  }
  0x9e   :  { %208 = dma.done.wait [#allocation4], 128  }
  0x9f   :  { %209 = vsyncadd [#allocation4], 4294967168 }
  0xa0   :  { %108 = vsyncpa [#allocation3], 1 }
  0xa1   :  { %109 = vsyncpa [#allocation6], 1 }
  0xa2   :  { %110 = vsyncpa [#allocation4], 1 }

</bundles_post_ra>
